<compile_context>
chip_gen: v5e
topology: v5e:2x2
jax: 0.10.0
libtpu: 0.0.40
codegen_flags: <defaults>
</compile_context>

<pallas_src>
import math
import numpy as np
import jax
import jax.numpy as jnp
from jax.experimental import pallas as pl
from jax.experimental.pallas import tpu as pltpu


def _round_up(a, b):
    return (a + b - 1) // b * b


# ---------------------------------------------------------------------------
# Pallas kernel: two-pass (stats / output) ExternalAttention over token tiles.
# Layout is channels-first: x is (C, TN) with tokens on the lane axis.
#   attn^T = Wk @ x                       (S, TN)
#   pass 0: per-row (per-S) running max / sum-of-exp over all token tiles
#   pass 1: p = exp(attn - lse)  (exact softmax over tokens)
#           [out_unnorm ; rs] = [Wv ; 1^T] @ p        (C+1, TN)
#           y = relu(x + out_unnorm / (1e-9 + rs))
# ---------------------------------------------------------------------------
def _make_ea_kernel(S, C, TN, n_true, n_pad):
    needs_mask = (n_pad != n_true)

    def ea_kernel(x_ref, wk_ref, wva_ref, o_ref, m_sc, s_sc):
        p = pl.program_id(1)          # 0: softmax-stats pass, 1: output pass
        t = pl.program_id(2)          # token tile
        nt = pl.num_programs(2)

        x = x_ref[0]                  # (C, TN)
        # Key projection: one merged (S, C) x (C, TN) MXU matmul.
        attn = jnp.dot(wk_ref[...], x, preferred_element_type=jnp.float32)  # (S, TN)
        if needs_mask:
            col = jax.lax.broadcasted_iota(jnp.int32, attn.shape, 1) + t * TN
            attn = jnp.where(col < n_true, attn, -1e30)

        @pl.when(p == 0)
        def _stats_pass():
            @pl.when(t == 0)
            def _init():
                m_sc[...] = jnp.full(m_sc.shape, -jnp.inf, m_sc.dtype)
                s_sc[...] = jnp.zeros(s_sc.shape, s_sc.dtype)

            m_old = m_sc[...]                                           # (S, 1)
            m_new = jnp.maximum(m_old, jnp.max(attn, axis=1, keepdims=True))
            s_sc[...] = (s_sc[...] * jnp.exp(m_old - m_new)
                         + jnp.sum(jnp.exp(attn - m_new), axis=1, keepdims=True))
            m_sc[...] = m_new

            @pl.when(t == nt - 1)
            def _finalize():
                # log-sum-exp: exp(attn - lse) is the exact softmax value, so
                # the 1/denominator never touches the (S, TN) stream.
                m_sc[...] = m_sc[...] + jnp.log(s_sc[...])

        @pl.when(p == 1)
        def _output_pass():
            pm = jnp.exp(attn - m_sc[...])                              # (S, TN)
            # Rows 0..C-1: Wv @ softmax; extra all-ones row: per-token column
            # sums for the L1 renorm — one matmul instead of two (S,TN) scales.
            res = jnp.dot(wva_ref[...], pm, preferred_element_type=jnp.float32)
            out = res[:C, :] / (1e-9 + res[C:C + 1, :])                 # (C, TN)
            o_ref[0] = jnp.maximum(x + out, 0.0).astype(o_ref.dtype)

    return ea_kernel


def external_attention_pallas(x_bcn, wk, wv, *, vmem_budget_bytes=24 * 1024 * 1024):
    """x_bcn: (B, C, N) channels-first; wk: (S, C) = mk.weight; wv: (C, S) = mv.weight.
    Returns relu(x + EA(x)) in (B, C, N) layout."""
    B, C, N = x_bcn.shape
    S = wk.shape[0]

    # Token-tile size: lane-dense (multiple of 128), sized from a VMEM budget:
    # double-buffered in/out tiles + (S,TN) attn/exp streams + (C+1,TN) result.
    bytes_per_token = 4 * (4 * C + 2 * S + (C + 1) + 8)
    tn_cap = max(128, min(16384, (vmem_budget_bytes // bytes_per_token) // 128 * 128))
    n128 = _round_up(N, 128)
    nt = -(-n128 // tn_cap)                       # number of token tiles
    tn = _round_up(-(-n128 // nt), 128)           # tile size (multiple of 128)
    n_pad = nt * tn

    if n_pad != N:
        x_bcn = jnp.pad(x_bcn, ((0, 0), (0, 0), (0, n_pad - N)))

    # Static augmented value weight: last all-ones row -> per-token column sums.
    wva = jnp.concatenate([wv, jnp.ones((1, S), wv.dtype)], axis=0)     # (C+1, S)

    kernel = _make_ea_kernel(S, C, tn, N, n_pad)
    y = pl.pallas_call(
        kernel,
        out_shape=jax.ShapeDtypeStruct((B, C, n_pad), x_bcn.dtype),
        grid_spec=pltpu.PrefetchScalarGridSpec(
            num_scalar_prefetch=0,
            grid=(B, 2, nt),                      # (batch, pass, token tile)
            in_specs=[
                pl.BlockSpec((1, C, tn), lambda b, p, t: (b, 0, t)),
                pl.BlockSpec((S, C), lambda b, p, t: (0, 0)),
                pl.BlockSpec((C + 1, S), lambda b, p, t: (0, 0)),
            ],
            # Pass 0 parks the output buffer on tile 0 (never written there, so
            # no extra writebacks); pass 1 walks and writes the real tiles.
            out_specs=pl.BlockSpec((1, C, tn), lambda b, p, t: (b, 0, p * t)),
            scratch_shapes=[pltpu.VMEM((S, 1), jnp.float32),   # running max -> lse
                            pltpu.VMEM((S, 1), jnp.float32)],  # running sum of exp
        ),
        compiler_params=pltpu.CompilerParams(
            # Batch shards across v7x TCs; pass/tile axes carry softmax state.
            dimension_semantics=("parallel", "arbitrary", "arbitrary"),
            vmem_limit_bytes=40 * 1024 * 1024,    # leaves headroom on v7x (64 MiB)
        ),
    )(x_bcn, wk, wva)

    if n_pad != N:
        y = y[:, :, :N]
    return y


# ---------------------------------------------------------------------------
# Plain-JAX glue
# ---------------------------------------------------------------------------
def _bilinear_interp_matrix(out_size, in_size):
    """Dense 1-D bilinear interpolation matrix, matching
    torch.nn.Upsample(mode='bilinear', align_corners=False)."""
    i = np.arange(out_size, dtype=np.float64)
    src = np.maximum((i + 0.5) * (in_size / out_size) - 0.5, 0.0)
    i0 = np.minimum(np.floor(src).astype(np.int64), in_size - 1)
    i1 = np.minimum(i0 + 1, in_size - 1)
    lam = (src - i0).astype(np.float32)
    m = np.zeros((out_size, in_size), dtype=np.float32)
    m[np.arange(out_size), i0] += 1.0 - lam
    m[np.arange(out_size), i1] += lam
    return jnp.asarray(m)


def upsample_bilinear_matmul(x, out_h, out_w):
    """Bilinear upsample as two small interpolation matmuls (no gathers)."""
    uh = _bilinear_interp_matrix(out_h, x.shape[2])
    uw = _bilinear_interp_matrix(out_w, x.shape[3])
    x = jnp.einsum('oh,bchw->bcow', uh, x)
    x = jnp.einsum('pw,bcow->bcop', uw, x)
    return x


def cross_resolution_attention(x_h, x_l, wk, wv):
    """x_h: (B, Ch, H, W); x_l: (B, Cl, H, W) or (B, Cl, H//2, W//2);
    wk: (S, Ch+Cl) = mk.weight; wv: (Ch+Cl, S) = mv.weight."""
    B, ch, H, W = x_h.shape
    if x_h.shape[2:] != x_l.shape[2:]:
        # The torch module hard-codes nn.Upsample(scale_factor=2); anything
        # else would break its concat, so require the exact 2x relationship.
        assert (H, W) == (2 * x_l.shape[2], 2 * x_l.shape[3]), (
            "x_l must match x_h or be exactly half its resolution")
        x_l = upsample_bilinear_matmul(x_l, H, W)
    cl = x_l.shape[1]
    # Channels-first lane-dense layout; concat once in HBM so the kernel sees a
    # single aligned (C, N) slab (avoids sublane-misaligned stores for Ch%8!=0).
    x = jnp.concatenate([x_h, x_l], axis=1).reshape(B, ch + cl, H * W)
    y = external_attention_pallas(x, wk, wv)
    return y.reshape(B, ch + cl, H, W)


# Pure-JAX reference (torch layout, gather-based upsample) for verification.
def _upsample_bilinear_2x_ref(x):
    B, C, H, W = x.shape

    def src_idx(out_size, in_size):
        i = jnp.arange(out_size, dtype=jnp.float32)
        src = jnp.maximum((i + 0.5) * (in_size / out_size) - 0.5, 0.0)
        i0 = jnp.minimum(jnp.floor(src).astype(jnp.int32), in_size - 1)
        i1 = jnp.minimum(i0 + 1, in_size - 1)
        lam = src - i0.astype(jnp.float32)
        return i0, i1, lam

    h0, h1, lh = src_idx(2 * H, H)
    w0, w1, lw = src_idx(2 * W, W)
    top = (x[:, :, h0, :] * (1.0 - lh)[None, None, :, None]
           + x[:, :, h1, :] * lh[None, None, :, None])
    return (top[:, :, :, w0] * (1.0 - lw)[None, None, None, :]
            + top[:, :, :, w1] * lw[None, None, None, :])


def cross_resolution_attention_ref(x_h, x_l, wk, wv):
    if x_h.shape[2:] != x_l.shape[2:]:
        x_l = _upsample_bilinear_2x_ref(x_l)
    x = jnp.concatenate([x_h, x_l], axis=1)
    B, C, H, W = x.shape
    q = jnp.transpose(x.reshape(B, C, H * W), (0, 2, 1))         # (B, N, C)
    attn = jnp.einsum("bnc,sc->bns", q, wk)
    attn = jax.nn.softmax(attn, axis=1)
    attn = attn / (1e-9 + jnp.sum(attn, axis=2, keepdims=True))
    out = jnp.einsum("bns,cs->bnc", attn, wv)
    y = jnp.maximum(q + out, 0.0)
    return jnp.transpose(y, (0, 2, 1)).reshape(B, C, H, W)


if __name__ == "__main__":
    key = jax.random.PRNGKey(0)
    k1, k2, k3, k4, k5, k6 = jax.random.split(key, 6)

    # Small shapes consistent with CrossResolutionAttention(chann_high=4, chann_low=4)
    B, chann_high, chann_low = 2, 4, 4
    H, W = 16, 16
    d_model = chann_high + chann_low          # 8
    S = 64                                    # ExternalAttention default S

    x_h = jax.random.normal(k1, (B, chann_high, H, W), dtype=jnp.float32)
    x_l = jax.random.normal(k2, (B, chann_low, H // 2, W // 2), dtype=jnp.float32)

    # PyTorch Linear default init: U(-1/sqrt(fan_in), 1/sqrt(fan_in)), bias=False
    bk = 1.0 / math.sqrt(d_model)
    wk = jax.random.uniform(k3, (S, d_model), jnp.float32, -bk, bk)   # mk.weight
    bv = 1.0 / math.sqrt(S)
    wv = jax.random.uniform(k4, (d_model, S), jnp.float32, -bv, bv)   # mv.weight

    # Main path: half-resolution x_l (exercises the upsample branch).
    y = jax.block_until_ready(cross_resolution_attention(x_h, x_l, wk, wv))
    y_ref = cross_resolution_attention_ref(x_h, x_l, wk, wv)
    np.testing.assert_allclose(np.asarray(y), np.asarray(y_ref), rtol=1e-4, atol=1e-4)

    # Second check: equal resolutions + H*W not a multiple of 128 (exercises the
    # lane-padding / in-kernel masking path).
    H2, W2 = 10, 10
    x_h2 = jax.random.normal(k5, (1, chann_high, H2, W2), dtype=jnp.float32)
    x_l2 = jax.random.normal(k6, (1, chann_low, H2, W2), dtype=jnp.float32)
    y2 = jax.block_until_ready(cross_resolution_attention(x_h2, x_l2, wk, wv))
    y2_ref = cross_resolution_attention_ref(x_h2, x_l2, wk, wv)
    np.testing.assert_allclose(np.asarray(y2), np.asarray(y2_ref), rtol=1e-4, atol=1e-4)

    print("KERNEL_OK")
</pallas_src>

<mosaic_0001>
module attributes {stable_mosaic.version = 11 : i64} {
  func.func @ea_kernel(%arg0: i32, %arg1: i32, %arg2: i32, %arg3: memref<1x8x256xf32, #tpu.memory_space<vmem>>, %arg4: memref<64x8xf32, #tpu.memory_space<vmem>>, %arg5: memref<9x64xf32, #tpu.memory_space<vmem>>, %arg6: memref<1x8x256xf32, #tpu.memory_space<vmem>>, %arg7: memref<64x1xf32, #tpu.memory_space<vmem>>, %arg8: memref<64x1xf32, #tpu.memory_space<vmem>>) attributes {dimension_semantics = [#tpu.dimension_semantics<parallel>, #tpu.dimension_semantics<arbitrary>, #tpu.dimension_semantics<arbitrary>], iteration_bounds = array<i64: 2, 2, 1>, scalar_prefetch = 0 : i64, scratch_operands = 2 : i64, tpu.core_type = #tpu.core_type<tc>, window_params = [{transform_indices = @transform_0, window_bounds = array<i64: 1, 8, 256>}, {pipeline_mode = #tpu.pipeline_mode<synchronous>, transform_indices = @transform_1, window_bounds = array<i64: 64, 8>}, {pipeline_mode = #tpu.pipeline_mode<synchronous>, transform_indices = @transform_2, window_bounds = array<i64: 9, 64>}, {transform_indices = @transform_3, window_bounds = array<i64: 1, 8, 256>}]} {
    %c0 = arith.constant 0 : index
    %c0_0 = arith.constant 0 : index
    %c0_1 = arith.constant 0 : index
    %0 = vector.load %arg3[%c0, %c0_0, %c0_1] : memref<1x8x256xf32, #tpu.memory_space<vmem>>, vector<1x8x256xf32>
    %1 = vector.shape_cast %0 : vector<1x8x256xf32> to vector<8x256xf32>
    %c0_2 = arith.constant 0 : index
    %c0_3 = arith.constant 0 : index
    %2 = vector.load %arg4[%c0_2, %c0_3] : memref<64x8xf32, #tpu.memory_space<vmem>>, vector<64x8xf32>
    %cst = arith.constant dense<0.000000e+00> : vector<64x256xf32>
    %3 = tpu.matmul %2, %1, %cst {dimension_numbers = #tpu.dot_dimension_numbers<[1], [0], [0], [1], [0, 0, 1, 1], [], []>} : vector<64x8xf32>, vector<8x256xf32>, vector<64x256xf32> -> vector<64x256xf32>
    %c0_i32 = arith.constant 0 : i32
    %4 = arith.cmpi eq, %arg1, %c0_i32 : i32
    %5 = arith.extui %4 : i1 to i32
    %c0_i32_4 = arith.constant 0 : i32
    %6 = arith.cmpi ne, %5, %c0_i32_4 : i32
    scf.if %6 {
      %c0_i32_6 = arith.constant 0 : i32
      %10 = arith.cmpi eq, %arg2, %c0_i32_6 : i32
      %11 = arith.extui %10 : i1 to i32
      %c0_i32_7 = arith.constant 0 : i32
      %12 = arith.cmpi ne, %11, %c0_i32_7 : i32
      scf.if %12 {
        %cst_20 = arith.constant 0xFF800000 : f32
        %32 = vector.broadcast %cst_20 : f32 to vector<64x1xf32>
        %c0_21 = arith.constant 0 : index
        %c0_22 = arith.constant 0 : index
        %33 = vector.load %arg7[%c0_21, %c0_22] : memref<64x1xf32, #tpu.memory_space<vmem>>, vector<64x1xf32>
        tpu.vector_store %arg7[%c0_21, %c0_22], %32 {strides = array<i32>} : memref<64x1xf32, #tpu.memory_space<vmem>>, vector<64x1xf32>,
        %cst_23 = arith.constant 0.000000e+00 : f32
        %34 = vector.broadcast %cst_23 : f32 to vector<64x1xf32>
        %c0_24 = arith.constant 0 : index
        %c0_25 = arith.constant 0 : index
        %35 = vector.load %arg8[%c0_24, %c0_25] : memref<64x1xf32, #tpu.memory_space<vmem>>, vector<64x1xf32>
        tpu.vector_store %arg8[%c0_24, %c0_25], %34 {strides = array<i32>} : memref<64x1xf32, #tpu.memory_space<vmem>>, vector<64x1xf32>,
      } else {
      }
      %c0_8 = arith.constant 0 : index
      %c0_9 = arith.constant 0 : index
      %13 = vector.load %arg7[%c0_8, %c0_9] : memref<64x1xf32, #tpu.memory_space<vmem>>, vector<64x1xf32>
      %cst_10 = arith.constant dense<0xFF800000> : vector<64xf32>
      %14 = vector.multi_reduction <maximumf>, %3, %cst_10 [1] : vector<64x256xf32> to vector<64xf32>
      %15 = vector.shape_cast %14 : vector<64xf32> to vector<64x1xf32>
      %16 = arith.maximumf %13, %15 : vector<64x1xf32>
      %c0_11 = arith.constant 0 : index
      %c0_12 = arith.constant 0 : index
      %17 = vector.load %arg8[%c0_11, %c0_12] : memref<64x1xf32, #tpu.memory_space<vmem>>, vector<64x1xf32>
      %18 = arith.subf %13, %16 : vector<64x1xf32>
      %19 = math.exp %18 : vector<64x1xf32>
      %20 = arith.mulf %17, %19 : vector<64x1xf32>
      %21 = vector.broadcast %16 : vector<64x1xf32> to vector<64x256xf32>
      %22 = arith.subf %3, %21 : vector<64x256xf32>
      %23 = math.exp %22 : vector<64x256xf32>
      %cst_13 = arith.constant dense<0.000000e+00> : vector<64xf32>
      %24 = vector.multi_reduction <add>, %23, %cst_13 [1] : vector<64x256xf32> to vector<64xf32>
      %25 = vector.shape_cast %24 : vector<64xf32> to vector<64x1xf32>
      %26 = arith.addf %20, %25 : vector<64x1xf32>
      %c0_14 = arith.constant 0 : index
      %c0_15 = arith.constant 0 : index
      %27 = vector.load %arg8[%c0_14, %c0_15] : memref<64x1xf32, #tpu.memory_space<vmem>>, vector<64x1xf32>
      tpu.vector_store %arg8[%c0_14, %c0_15], %26 {strides = array<i32>} : memref<64x1xf32, #tpu.memory_space<vmem>>, vector<64x1xf32>,
      %c0_16 = arith.constant 0 : index
      %c0_17 = arith.constant 0 : index
      %28 = vector.load %arg7[%c0_16, %c0_17] : memref<64x1xf32, #tpu.memory_space<vmem>>, vector<64x1xf32>
      tpu.vector_store %arg7[%c0_16, %c0_17], %16 {strides = array<i32>} : memref<64x1xf32, #tpu.memory_space<vmem>>, vector<64x1xf32>,
      %c0_i32_18 = arith.constant 0 : i32
      %29 = arith.cmpi eq, %arg2, %c0_i32_18 : i32
      %30 = arith.extui %29 : i1 to i32
      %c0_i32_19 = arith.constant 0 : i32
      %31 = arith.cmpi ne, %30, %c0_i32_19 : i32
      scf.if %31 {
        %c0_20 = arith.constant 0 : index
        %c0_21 = arith.constant 0 : index
        %32 = vector.load %arg7[%c0_20, %c0_21] : memref<64x1xf32, #tpu.memory_space<vmem>>, vector<64x1xf32>
        %c0_22 = arith.constant 0 : index
        %c0_23 = arith.constant 0 : index
        %33 = vector.load %arg8[%c0_22, %c0_23] : memref<64x1xf32, #tpu.memory_space<vmem>>, vector<64x1xf32>
        %34 = math.log %33 : vector<64x1xf32>
        %35 = arith.addf %32, %34 : vector<64x1xf32>
        %c0_24 = arith.constant 0 : index
        %c0_25 = arith.constant 0 : index
        %36 = vector.load %arg7[%c0_24, %c0_25] : memref<64x1xf32, #tpu.memory_space<vmem>>, vector<64x1xf32>
        tpu.vector_store %arg7[%c0_24, %c0_25], %35 {strides = array<i32>} : memref<64x1xf32, #tpu.memory_space<vmem>>, vector<64x1xf32>,
      } else {
      }
    } else {
    }
    %c1_i32 = arith.constant 1 : i32
    %7 = arith.cmpi eq, %arg1, %c1_i32 : i32
    %8 = arith.extui %7 : i1 to i32
    %c0_i32_5 = arith.constant 0 : i32
    %9 = arith.cmpi ne, %8, %c0_i32_5 : i32
    scf.if %9 {
      %c0_6 = arith.constant 0 : index
      %c0_7 = arith.constant 0 : index
      %10 = vector.load %arg7[%c0_6, %c0_7] : memref<64x1xf32, #tpu.memory_space<vmem>>, vector<64x1xf32>
      %11 = vector.broadcast %10 : vector<64x1xf32> to vector<64x256xf32>
      %12 = arith.subf %3, %11 : vector<64x256xf32>
      %13 = math.exp %12 : vector<64x256xf32>
      %c0_8 = arith.constant 0 : index
      %c0_9 = arith.constant 0 : index
      %14 = vector.load %arg5[%c0_8, %c0_9] : memref<9x64xf32, #tpu.memory_space<vmem>>, vector<9x64xf32>
      %cst_10 = arith.constant dense<0.000000e+00> : vector<9x256xf32>
      %15 = tpu.matmul %14, %13, %cst_10 {dimension_numbers = #tpu.dot_dimension_numbers<[1], [0], [0], [1], [0, 0, 1, 1], [], []>} : vector<9x64xf32>, vector<64x256xf32>, vector<9x256xf32> -> vector<9x256xf32>
      %16 = vector.extract_strided_slice %15 {offsets = [0, 0], sizes = [8, 256], strides = [1, 1]} : vector<9x256xf32> to vector<8x256xf32>
      %17 = vector.extract_strided_slice %15 {offsets = [8, 0], sizes = [1, 256], strides = [1, 1]} : vector<9x256xf32> to vector<1x256xf32>
      %cst_11 = arith.constant 9.99999971E-10 : f32
      %18 = vector.broadcast %cst_11 : f32 to vector<1x256xf32>
      %19 = arith.addf %18, %17 : vector<1x256xf32>
      %20 = vector.broadcast %19 : vector<1x256xf32> to vector<8x256xf32>
      %21 = arith.divf %16, %20 : vector<8x256xf32>
      %22 = arith.addf %1, %21 : vector<8x256xf32>
      %cst_12 = arith.constant 0.000000e+00 : f32
      %23 = vector.broadcast %cst_12 : f32 to vector<8x256xf32>
      %24 = arith.maximumf %22, %23 : vector<8x256xf32>
      %c0_13 = arith.constant 0 : index
      %c0_14 = arith.constant 0 : index
      %c0_15 = arith.constant 0 : index
      %25 = vector.load %arg6[%c0_13, %c0_14, %c0_15] : memref<1x8x256xf32, #tpu.memory_space<vmem>>, vector<1x8x256xf32>
      %26 = vector.shape_cast %25 : vector<1x8x256xf32> to vector<8x256xf32>
      %27 = vector.shape_cast %24 : vector<8x256xf32> to vector<1x8x256xf32>
      tpu.vector_store %arg6[%c0_13, %c0_14, %c0_15], %27 {strides = array<i32>} : memref<1x8x256xf32, #tpu.memory_space<vmem>>, vector<1x8x256xf32>,
    } else {
    }
    return
  }
  func.func @transform_0(%arg0: i32, %arg1: i32, %arg2: i32) -> (i32, i32, i32) {
    %c0_i32 = arith.constant 0 : i32
    %c0_i32_0 = arith.constant 0 : i32
    return %arg0, %c0_i32, %arg2 : i32, i32, i32
  }
  func.func @transform_1(%arg0: i32, %arg1: i32, %arg2: i32) -> (i32, i32) {
    %c0_i32 = arith.constant 0 : i32
    %c0_i32_0 = arith.constant 0 : i32
    %c0_i32_1 = arith.constant 0 : i32
    return %c0_i32, %c0_i32_0 : i32, i32
  }
  func.func @transform_2(%arg0: i32, %arg1: i32, %arg2: i32) -> (i32, i32) {
    %c0_i32 = arith.constant 0 : i32
    %c0_i32_0 = arith.constant 0 : i32
    %c0_i32_1 = arith.constant 0 : i32
    return %c0_i32, %c0_i32_0 : i32, i32
  }
  func.func @transform_3(%arg0: i32, %arg1: i32, %arg2: i32) -> (i32, i32, i32) {
    %0 = arith.muli %arg1, %arg2 : i32
    %c0_i32 = arith.constant 0 : i32
    %c0_i32_0 = arith.constant 0 : i32
    return %arg0, %c0_i32, %0 : i32, i32, i32
  }
}

</mosaic_0001>

<bundles_post_ra>
// kernel: tpu_custom_call.1
= control target key start
LH: loop header
LB: loop body
LE: loop exit
PB: predicated region body
PF: predicated region fallthrough
CT: control target
= control target key end

     0   :  { %8 = vsyncpa [#allocation5], 0  ;;  %s1676_s0 = inlined_call_operand.vmem [shape: f32[2,8,256], index: 0, kind: input, shape index: {}]   ;;  %s1677_s1 = inlined_call_operand.vmem [shape: f32[64,8], index: 1, kind: input, shape index: {}]   ;;  %s1678_s2 = inlined_call_operand.vmem [shape: f32[9,64], index: 2, kind: input, shape index: {}]   ;;  %s1679_s3 = inlined_call_operand.hbm [shape: f32[2,8,256], index: 3, kind: output, shape index: {}]  }
   0x1   :  { %10 = vsyncpa [#allocation5 + $0x1], 0  ;;  %s1273_s12 = smov 0   ;;  %s1275_s13 = smov 0  }
   0x2   :  { %s1277_s14 = smov 0   ;;  %s1279_s15 = smov 0  }
   0x3   :  { %s1281_s16 = smov 0   ;;  %s1283_s17 = smov 0  }
   0x4   :  { %s1285_s18 = smov 0   ;;  %s1287_s19 = smov 0  }
   0x5 LB: > { %s917_s20 = sadd.s32 4294967295, %s1247_s19   ;;  %s918_s21 = sadd.s32 4294967294, %s1247_s19   ;;  %s1247_s19 = sphi %s1287_s19, %s16_s19   ;;  %s1243_s18 = sphi %s1285_s18, %s1688_s18   ;;  %s1239_s17 = sphi %s1283_s17, %s1687_s17   ;;  %s1235_s16 = sphi %s1281_s16, %s1686_s16   ;;  %s1231_s15 = sphi %s1279_s15, %s1685_s15   ;;  %s1227_s14 = sphi %s1277_s14, %s1684_s14   ;;  %s1223_s13 = sphi %s1275_s13, %s1683_s13   ;;  %s1219_s12 = sphi %s1273_s12, %s1682_s12  }
   0x6   : > { %s31_s22 = sadd.s32 1, %s1239_s17  ;;  %s35_s23 = sadd.s32 1, %s1243_s18 }
   0x7   : > { %p33_p0 = scmp.ge.s32.totalorder %s31_s22, 2  ;;  %p126_p1 = scmp.ne.s32.totalorder %s1227_s14, %s1223_s13 }
   0x8   : > { %p127_p2 = scmp.eq.s32.totalorder %s917_s20, 3  ;;  %p132_p4 = scmp.ne.s32.totalorder %s1223_s13, %s1219_s12 }
   0x9   : > { %s1690_s22 = smov (%p33_p0, %s31_s22), 0  ;;  %s1692_s23 = smov (!%p33_p0, %s35_s23), %s1243_s18 }
   0xa   : > { %p1322_p3 = por %p127_p2, %p126_p1  ;;  %p37_p5 = scmp.ge.s32.totalorder %s1692_s23, 2 }
   0xb   : > { %p133_p6 = scmp.eq.s32.totalorder %s918_s21, 3  ;;  %p921_p7 = scmp.ge.s32.totalorder %s1247_s19, 1 }
   0xc   : > { %p170_p8 = scmp.lt.s32.totalorder %s1247_s19, 5  ;;  %s1694_s23 = smov (%p37_p5, %s1692_s23), 0 }
   0xd   : > { %p1332_p9 = por %p133_p6, %p132_p4  ;;  %s111_s26 = ssub.s32 %s1243_s18, %s1694_s23 }
   0xe   : > { %p171_p10 = pnand %p921_p7, %p170_p8  ;;  %s116_s27 = sadd.s32 1, %s1227_s14 }
   0xf   : > { %p114_p11 = scmp.eq.s32.totalorder %s111_s26, 0  ;;  %p199_p12 = scmp.lt.s32.totalorder (!%p171_p10), %s1235_s16, 1 }
  0x10   : > { %174 = sbr.rel (%p171_p10) target bundleno = 929 (0x3a1), region = 32  ;;  %s195_s29 = sand.u32 (!%p171_p10), 1, %s1223_s13  }
  0x11   : > { %s1340_s28 = scalar_select %p114_p11, %s1227_s14, %s116_s27  }
  0x12   : > { %s1346_s30 = sshll.u32 (!%p171_p10), %s195_s29, 4  ;;  %p941_p13 = scmp.ne.s32.totalorder (!%p171_p10), %s1231_s15, 0 }
  0x13   : > { %s1433_s21 = scalar_lea.vmem (!%p171_p10), [#allocation4], %s1346_s30 }
  0x15   : > { %s200_s4 = scalar_select %p199_p12, %s1235_s16, 1  ;;  %v216_v0 = vld [vmem:[%s1677_s1 + $0x20] sm:$0xff]  ;;  %vm220_vm0 = vcmask 64512   ;;  %v217_v4 = vld [vmem:[%s1677_s1 + $0x28] sm:$0xff]  ;;  %v218_v6 = vld [vmem:[%s1677_s1 + $0x30] sm:$0xff] }
  0x16   : > { %v212_v3 = vld [vmem:[%s1677_s1] sm:$0xff]  ;;  %v213_v5 = vld [vmem:[%s1677_s1 + $0x8] sm:$0xff]  ;;  %v214_v7 = vld [vmem:[%s1677_s1 + $0x10] sm:$0xff] }
  0x17   : > { %s952_s5 = sshll.u32 %s200_s4, 4  ;;  %v219_v8 = vld [vmem:[%s1677_s1 + $0x38] sm:$0xff] }
  0x18   : > { %s206_s8 = scalar_lea.vmem %s1676_s0, %s952_s5  ;;  %v215_v9 = vld [vmem:[%s1677_s1 + $0x18] sm:$0xff] }
  0x19   : > { %v1355_v1 = vld [vmem:[%s206_s8] sm:$0xff]  ;;  %v1357_v2 = vld [vmem:[%s206_s8 + $0x8] sm:$0xff] }
  0x1a   : > { %954 = vmatpush.msra.mxu2 %v1355_v1  ;;  %955 = vmatpush.msra.mxu3 %v1357_v2 }
  0x1b   : > { %929 = vmatmul.msk.f32.vlgmr.msra.gmra.mxu2 %vm220_vm0, %v216_v0  ;;  %937 = vmatmul.msk.f32.vlgmr.msra.gmra.mxu3 %vm220_vm0, %v216_v0 }
  0x1c   : > { %260 = vmatpush.msra.mxu0 %v1355_v1  ;;  %301 = vmatpush.msra.mxu1 %v1357_v2 }
  0x1d   : > { %925 = vmatmul.msk.f32.vlgmr.msra.gmra.mxu0 %vm220_vm0, %v212_v3  ;;  %933 = vmatmul.msk.f32.vlgmr.msra.gmra.mxu1 %vm220_vm0, %v212_v3 }
  0x23   : > { %930 = vmatmul.msk.f32.gmra.mxu2 %vm220_vm0, %v217_v4  ;;  %938 = vmatmul.msk.f32.gmra.mxu3 %vm220_vm0, %v217_v4 }
  0x25   : > { %926 = vmatmul.msk.f32.gmra.mxu0 %vm220_vm0, %v213_v5  ;;  %934 = vmatmul.msk.f32.gmra.mxu1 %vm220_vm0, %v213_v5 }
  0x2b   : > { %931 = vmatmul.msk.f32.gmra.mxu2 %vm220_vm0, %v218_v6  ;;  %939 = vmatmul.msk.f32.gmra.mxu3 %vm220_vm0, %v218_v6 }
  0x2d   : > { %927 = vmatmul.msk.f32.gmra.mxu0 %vm220_vm0, %v214_v7  ;;  %935 = vmatmul.msk.f32.gmra.mxu1 %vm220_vm0, %v214_v7 }
  0x33   : > { %932 = vmatmul.msk.f32.gmra.mxu2 %vm220_vm0, %v219_v8  ;;  %940 = vmatmul.msk.f32.gmra.mxu3 %vm220_vm0, %v219_v8 }
  0x35   : > { %928 = vmatmul.msk.f32.gmra.mxu0 %vm220_vm0, %v215_v9  ;;  %936 = vmatmul.msk.f32.gmra.mxu1 %vm220_vm0, %v215_v9 }
  0x9a   : > { %v1400_v10 = vpop.f32.mrf.mxu0  ;;  %v1402_v11 = vpop.f32.mrf.mxu1 }
  0x9e   : > { %v1404_v12 = vpop.f32.mrf.mxu2  ;;  %v1406_v13 = vpop.f32.mrf.mxu3 }
  0xa2   : > { %v1408_v14 = vpop.f32.mrf.mxu0  ;;  %v1410_v15 = vpop.f32.mrf.mxu1 }
  0xa6   : > { %v1412_v16 = vpop.f32.mrf.mxu2  ;;  %v1414_v17 = vpop.f32.mrf.mxu3 }
  0xaa   : > { %v1416_v18 = vpop.f32.mrf.mxu0  ;;  %v1418_v19 = vpop.f32.mrf.mxu1 }
  0xae   : > { %v1420_v20 = vpop.f32.mrf.mxu2  ;;  %v1422_v21 = vpop.f32.mrf.mxu3 }
  0xb2   : > { %v1424_v22 = vpop.f32.mrf.mxu0  ;;  %v1426_v23 = vpop.f32.mrf.mxu1  ;;  %330 = sbr.rel (%p941_p13) target bundleno = 596 (0x254), region = 36 }
  0xb6   : > { %v1428_v24 = vpop.f32.mrf.mxu2  ;;  %v1430_v25 = vpop.f32.mrf.mxu3 }
  0xb7   : > { %v372_v26 = vmax.f32 %v1404_v12, %v1406_v13  ;;  %v366_v27 = vmax.f32 %v1416_v18, %v1418_v19  ;;  %v360_v28 = vmax.f32 %v1400_v10, %v1402_v11  ;;  %v375_v29 = vmax.f32 %v1412_v16, %v1414_v17 }
  0xb8   : > { %v369_v30 = vmax.f32 %v1424_v22, %v1426_v23  ;;  %v363_v31 = vmax.f32 %v1408_v14, %v1410_v15  ;;  %v381_v32 = vmax.f32 %v1428_v24, %v1430_v25  ;;  %v378_v33 = vmax.f32 %v1420_v20, %v1422_v21 }
  0xb9   : > { %373 = vmax.xlane.f32.xlu2 %v372_v26  ;;  %367 = vmax.xlane.f32.xlu1 %v366_v27  ;;  %vm335_vm1 = vcmask 7168   ;;  %v1249_v34 = vmov -inf   ;;  %v1250_v35 = vmov 0   ;;  %v1251_v36 = vmov 0.0  }
  0xba   : > { %361 = vmax.xlane.f32.xlu0 %v360_v28  ;;  %340 = vst.msk [vmem:[#allocation2 + $0x20] sm:$0xff] %vm335_vm1, %v1249_v34  ;;  %1049 = vset.pattern.permute.xlu1 %v1250_v35 }
  0xbb   : > { %336 = vst.msk [vmem:[#allocation2] sm:$0xff] %vm335_vm1, %v1249_v34  ;;  %1047 = vset.pattern.permute.xlu2 %v1250_v35  ;;  %1048 = vset.pattern.permute.xlu0 %v1250_v35 }
  0xbc   : > { %337 = vst.msk [vmem:[#allocation2 + $0x8] sm:$0xff] %vm335_vm1, %v1249_v34 }
  0xbd   : > { %338 = vst.msk [vmem:[#allocation2 + $0x10] sm:$0xff] %vm335_vm1, %v1249_v34 }
  0xbe   : > { %339 = vst.msk [vmem:[#allocation2 + $0x18] sm:$0xff] %vm335_vm1, %v1249_v34 }
  0xbf   : > { %341 = vst.msk [vmem:[#allocation2 + $0x28] sm:$0xff] %vm335_vm1, %v1249_v34 }
  0xc0   : > { %342 = vst.msk [vmem:[#allocation2 + $0x30] sm:$0xff] %vm335_vm1, %v1249_v34 }
  0xc1   : > { %376 = vmax.xlane.f32.xlu2 %v375_v29  ;;  %370 = vmax.xlane.f32.xlu1 %v369_v30  ;;  %343 = vst.msk [vmem:[#allocation2 + $0x38] sm:$0xff] %vm335_vm1, %v1249_v34  ;;  %v1468_v37 = vld [vmem:[#allocation2 + $0x20] sm:$0xff] }
  0xc2   : > { %364 = vmax.xlane.f32.xlu0 %v363_v31  ;;  %344 = vst.msk [vmem:[#allocation3] sm:$0xff] %vm335_vm1, %v1251_v36  ;;  %v1472_v39 = vld [vmem:[#allocation2] sm:$0xff] }
  0xc3   : > { %345 = vst.msk [vmem:[#allocation3 + $0x8] sm:$0xff] %vm335_vm1, %v1251_v36  ;;  %v1501_v51 = vld [vmem:[#allocation2 + $0x8] sm:$0xff] }
  0xc4   : > { %346 = vst.msk [vmem:[#allocation3 + $0x10] sm:$0xff] %vm335_vm1, %v1251_v36  ;;  %v1470_v38 = vld [vmem:[#allocation2 + $0x10] sm:$0xff] }
  0xc5   : > { %347 = vst.msk [vmem:[#allocation3 + $0x18] sm:$0xff] %vm335_vm1, %v1251_v36  ;;  %v1499_v50 = vld [vmem:[#allocation2 + $0x18] sm:$0xff] }
  0xc6   : > { %348 = vst.msk [vmem:[#allocation3 + $0x20] sm:$0xff] %vm335_vm1, %v1251_v36  ;;  %v1497_v49 = vld [vmem:[#allocation2 + $0x28] sm:$0xff] }
  0xc7   : > { %349 = vst.msk [vmem:[#allocation3 + $0x28] sm:$0xff] %vm335_vm1, %v1251_v36  ;;  %v1529_v62 = vld [vmem:[#allocation2 + $0x30] sm:$0xff] }
  0xc8   : > { %350 = vst.msk [vmem:[#allocation3 + $0x30] sm:$0xff] %vm335_vm1, %v1251_v36  ;;  %v1527_v61 = vld [vmem:[#allocation2 + $0x38] sm:$0xff] }
  0xc9   : > { %382 = vmax.xlane.f32.xlu1 %v381_v32  ;;  %351 = vst.msk [vmem:[#allocation3 + $0x38] sm:$0xff] %vm335_vm1, %v1251_v36 }
  0xca   : > { %379 = vmax.xlane.f32.xlu0 %v378_v33 }
 0x12c   : > { %v374_v40 = vpop.xlane.xlu2 %373  ;;  %v368_v41 = vpop.xlane.xlu1 %367 }
 0x12d   : > { %v1475_v42 = vmax.f32 %v1468_v37, %v374_v40  ;;  %v1478_v43 = vmax.f32 %v1470_v38, %v368_v41  ;;  %v362_v44 = vpop.xlane.xlu0 %361 }
 0x12e   : > { %v1481_v45 = vmax.f32 %v1472_v39, %v362_v44 }
 0x12f   : > { %v404_v46 = vsub.f32 %v1468_v37, %v1475_v42  ;;  %565 = vst.msk [vmem:[#allocation2 + $0x20] sm:$0xff] %vm335_vm1, %v1475_v42  ;;  %v402_v47 = vsub.f32 %v1470_v38, %v1478_v43  ;;  %444 = vperm.xlu1 %1049, %v1478_v43  }
 0x130   : > { %563 = vst.msk [vmem:[#allocation2 + $0x10] sm:$0xff] %vm335_vm1, %v1478_v43  ;;  %v400_v48 = vsub.f32 %v1472_v39, %v1481_v45  ;;  %434 = vperm.xlu2 %1047, %v1481_v45   ;;  %v394_v43 = vld [vmem:[#allocation3 + $0x10] sm:$0xff] }
 0x131   : > { %561 = vst.msk [vmem:[#allocation2] sm:$0xff] %vm335_vm1, %v1481_v45  ;;  %v396_v45 = vld [vmem:[#allocation3 + $0x20] sm:$0xff] }
 0x134   : > { %v377_v52 = vpop.xlane.xlu2 %376  ;;  %v371_v53 = vpop.xlane.xlu1 %370 }
 0x135   : > { %v1504_v54 = vmax.f32 %v1497_v49, %v377_v52  ;;  %v1507_v55 = vmax.f32 %v1499_v50, %v371_v53  ;;  %v365_v56 = vpop.xlane.xlu0 %364 }
 0x136   : > { %v1510_v57 = vmax.f32 %v1501_v51, %v365_v56 }
 0x137   : > { %v405_v58 = vsub.f32 %v1497_v49, %v1504_v54  ;;  %566 = vst.msk [vmem:[#allocation2 + $0x28] sm:$0xff] %vm335_vm1, %v1504_v54  ;;  %v403_v59 = vsub.f32 %v1499_v50, %v1507_v55  ;;  %459 = vperm.xlu1 %1049, %v1504_v54  }
 0x138   : > { %564 = vst.msk [vmem:[#allocation2 + $0x18] sm:$0xff] %vm335_vm1, %v1507_v55  ;;  %v401_v60 = vsub.f32 %v1501_v51, %v1510_v57  ;;  %439 = vperm.xlu0 %1048, %v1510_v57   ;;  %449 = vperm.xlu2 %1047, %v1507_v55   ;;  %v576_v55 = vld [vmem:[#allocation2 + $0x20] sm:$0xff] }
 0x139   : > { %562 = vst.msk [vmem:[#allocation2 + $0x8] sm:$0xff] %vm335_vm1, %v1510_v57  ;;  %v418_v37 = vmul.f32 1.442695, %v405_v58  ;;  %v414_v57 = vmul.f32 1.442695, %v403_v59 }
 0x13a   : > { %v410_v38 = vmul.f32 1.442695, %v401_v60  ;;  %v397_v60 = vld [vmem:[#allocation3 + $0x28] sm:$0xff] }
 0x13c   : > { %v383_v63 = vpop.xlane.xlu1 %382 }
 0x13d   : > { %v1532_v0 = vmax.f32 %v1527_v61, %v383_v63  ;;  %v380_v3 = vpop.xlane.xlu0 %379 }
 0x13e   : > { %v1535_v4 = vmax.f32 %v1529_v62, %v380_v3 }
 0x13f   : > { %v407_v5 = vsub.f32 %v1527_v61, %v1532_v0  ;;  %568 = vst.msk [vmem:[#allocation2 + $0x38] sm:$0xff] %vm335_vm1, %v1532_v0  ;;  %469 = vperm.xlu1 %1049, %v1532_v0  }
 0x140   : > { %454 = vperm.xlu2 %1047, %v1475_v42   ;;  %v406_v6 = vsub.f32 %v1529_v62, %v1535_v4  ;;  %567 = vst.msk [vmem:[#allocation2 + $0x30] sm:$0xff] %vm335_vm1, %v1535_v4 }
 0x141   : > { %v422_v54 = vmul.f32 1.442695, %v407_v5 }
 0x142   : > { %v420_v59 = vmul.f32 1.442695, %v406_v6 }
 0x148   : > { %464 = vperm.xlu2 %1047, %v1535_v4  }
 0x18a   : > { %v435_v7 = vpop.permute.xlu2 %434 }
 0x18b   : > { %v472_v8 = vsub.f32 %v1400_v10, %v435_v7  ;;  %v473_v9 = vsub.f32 %v1402_v11, %v435_v7 }
 0x18d   : > { %v488_v26 = vmul.f32 1.442695, %v472_v8  ;;  %v490_v27 = vmul.f32 1.442695, %v473_v9 }
 0x18f   : > { %1050 = vpow2.f32 %v488_v26 }
 0x190   : > { %1052 = vpow2.f32 %v490_v27 }
 0x192   : > { %v450_v28 = vpop.permute.xlu2 %449 }
 0x195   : > { %v1051_v29 = vpop.eup %1050 }
 0x196   : > { %v1053_v30 = vpop.eup %1052 }
 0x197   : > { %v520_v31 = vadd.f32 %v1053_v30, %v1051_v29 }
 0x199   : > { %521 = vadd.xlane.f32.xlu0 %v520_v31  ;;  %v478_v31 = vsub.f32 %v1424_v22, %v450_v28 }
 0x19a   : > { %v455_v32 = vpop.permute.xlu2 %454 }
 0x19b   : > { %v480_v33 = vsub.f32 %v1404_v12, %v455_v32  ;;  %v481_v34 = vsub.f32 %v1406_v13, %v455_v32 }
 0x19d   : > { %v504_v35 = vmul.f32 1.442695, %v480_v33  ;;  %v506_v36 = vmul.f32 1.442695, %v481_v34 }
 0x19f   : > { %1054 = vpow2.f32 %v504_v35  ;;  %v479_v35 = vsub.f32 %v1426_v23, %v450_v28 }
 0x1a0   : > { %1056 = vpow2.f32 %v506_v36 }
 0x1a1   : > { %v445_v40 = vpop.permute.xlu1 %444 }
 0x1a2   : > { %v476_v41 = vsub.f32 %v1416_v18, %v445_v40  ;;  %v477_v44 = vsub.f32 %v1418_v19, %v445_v40 }
 0x1a4   : > { %v496_v52 = vmul.f32 1.442695, %v476_v41  ;;  %v498_v53 = vmul.f32 1.442695, %v477_v44  ;;  %v500_v44 = vmul.f32 1.442695, %v478_v31 }
 0x1a5   : > { %v1055_v56 = vpop.eup %1054 }
 0x1a6   : > { %v1057_v63 = vpop.eup %1056  ;;  %1058 = vpow2.f32 %v496_v52  ;;  %v502_v52 = vmul.f32 1.442695, %v479_v35 }
 0x1a7   : > { %1060 = vpow2.f32 %v498_v53  ;;  %v532_v3 = vadd.f32 %v1057_v63, %v1055_v56 }
 0x1a9   : > { %533 = vadd.xlane.f32.xlu0 %v532_v3  ;;  %v460_v7 = vpop.permute.xlu1 %459  ;;  %v465_v3 = vpop.permute.xlu2 %464 }
 0x1aa   : > { %v482_v8 = vsub.f32 %v1412_v16, %v460_v7  ;;  %v483_v9 = vsub.f32 %v1414_v17, %v460_v7  ;;  %v440_v26 = vpop.permute.xlu0 %439  ;;  %v485_v31 = vsub.f32 %v1422_v21, %v465_v3 }
 0x1ab   : > { %v474_v27 = vsub.f32 %v1408_v14, %v440_v26  ;;  %v475_v29 = vsub.f32 %v1410_v15, %v440_v26 }
 0x1ac   : > { %v1059_v30 = vpop.eup %1058  ;;  %v508_v32 = vmul.f32 1.442695, %v482_v8  ;;  %v510_v33 = vmul.f32 1.442695, %v483_v9 }
 0x1ad   : > { %v1061_v34 = vpop.eup %1060  ;;  %v492_v36 = vmul.f32 1.442695, %v474_v27  ;;  %v494_v40 = vmul.f32 1.442695, %v475_v29  ;;  %v484_v27 = vsub.f32 %v1420_v20, %v465_v3  ;;  %v408_v3 = vmul.f32 1.442695, %v400_v48 }
 0x1ae   : > { %1062 = vpow2.f32 %v508_v32  ;;  %v526_v41 = vadd.f32 %v1061_v34, %v1059_v30 }
 0x1af   : > { %1064 = vpow2.f32 %v510_v33  ;;  %v512_v34 = vmul.f32 1.442695, %v484_v27  ;;  %v416_v27 = vmul.f32 1.442695, %v404_v46 }
 0x1b0   : > { %1066 = vpow2.f32 %v492_v36  ;;  %527 = vadd.xlane.f32.xlu1 %v526_v41  ;;  %v514_v36 = vmul.f32 1.442695, %v485_v31 }
 0x1b1   : > { %1068 = vpow2.f32 %v494_v40  ;;  %v470_v53 = vpop.permute.xlu1 %469 }
 0x1b2   : > { %v486_v56 = vsub.f32 %v1428_v24, %v470_v53  ;;  %v487_v63 = vsub.f32 %v1430_v25, %v470_v53  ;;  %1070 = vpow2.f32 %v500_v44 }
 0x1b3   : > { %1072 = vpow2.f32 %v502_v52 }
 0x1b4   : > { %v1063_v7 = vpop.eup %1062  ;;  %v516_v8 = vmul.f32 1.442695, %v486_v56  ;;  %v518_v28 = vmul.f32 1.442695, %v487_v63 }
 0x1b5   : > { %v1065_v9 = vpop.eup %1064 }
 0x1b6   : > { %v1067_v26 = vpop.eup %1066  ;;  %1074 = vpow2.f32 %v516_v8  ;;  %v535_v29 = vadd.f32 %v1065_v9, %v1063_v7  ;;  %v392_v8 = vld [vmem:[#allocation3] sm:$0xff] }
 0x1b7   : > { %v1069_v30 = vpop.eup %1068  ;;  %1076 = vpow2.f32 %v518_v28 }
 0x1b8   : > { %536 = vadd.xlane.f32.xlu1 %v535_v29  ;;  %v523_v32 = vadd.f32 %v1069_v30, %v1067_v26  ;;  %v1071_v33 = vpop.eup %1070  ;;  %1078 = vpow2.f32 %v512_v34  ;;  %v412_v29 = vmul.f32 1.442695, %v402_v47  ;;  %v572_v34 = vld [vmem:[#allocation2] sm:$0xff] }
 0x1b9   : > { %v1073_v35 = vpop.eup %1072  ;;  %1080 = vpow2.f32 %v514_v36 }
 0x1ba   : > { %524 = vadd.xlane.f32.xlu2 %v523_v32  ;;  %v529_v52 = vadd.f32 %v1073_v35, %v1071_v33  ;;  %1082 = vpow2.f32 %v408_v3 }
 0x1bb   : > { %1084 = vpow2.f32 %v416_v27 }
 0x1bc   : > { %v1075_v40 = vpop.eup %1074 }
 0x1bd   : > { %v1077_v41 = vpop.eup %1076 }
 0x1be   : > { %v541_v44 = vadd.f32 %v1077_v41, %v1075_v40  ;;  %v1079_v53 = vpop.eup %1078  ;;  %v393_v41 = vld [vmem:[#allocation3 + $0x8] sm:$0xff] }
 0x1bf   : > { %v1081_v56 = vpop.eup %1080 }
 0x1c0   : > { %542 = vadd.xlane.f32.xlu0 %v541_v44  ;;  %v538_v63 = vadd.f32 %v1081_v56, %v1079_v53  ;;  %v1083_v7 = vpop.eup %1082 }
 0x1c1   : > { %v424_v28 = vmul.f32 %v1083_v7, %v392_v8  ;;  %v1085_v39 = vpop.eup %1084  ;;  %v399_v7 = vld [vmem:[#allocation3 + $0x38] sm:$0xff] }
 0x1c2   : > { %530 = vadd.xlane.f32.xlu2 %v529_v52  ;;  %v428_v48 = vmul.f32 %v1085_v39, %v396_v45 }
 0x1ca   : > { %539 = vadd.xlane.f32.xlu2 %v538_v63 }
 0x20c   : > { %v522_v9 = vpop.xlane.xlu0 %521 }
 0x20d   : > { %v544_v26 = vadd.f32 %v522_v9, %v424_v28  ;;  %v395_v9 = vld [vmem:[#allocation3 + $0x18] sm:$0xff] }
 0x20f   : > { %553 = vst.msk [vmem:[#allocation3] sm:$0xff] %vm335_vm1, %v544_v26 }
 0x216   : > { %v580_v30 = vld [vmem:[#allocation3] sm:$0xff] }
 0x217   : > { %1086 = vlog2.f32 %v580_v30 }
 0x218   : > { %1088 = vpow2.f32 %v412_v29 }
 0x219   : > { %1090 = vpow2.f32 %v418_v37 }
 0x21a   : > { %1092 = vpow2.f32 %v410_v38 }
 0x21c   : > { %v534_v31 = vpop.xlane.xlu0 %533 }
 0x21d   : > { %v1087_v32 = vpop.eup %1086  ;;  %v548_v42 = vadd.f32 %v534_v31, %v428_v48 }
 0x21e   : > { %v589_v46 = vmul.f32 0.6931472, %v1087_v32  ;;  %v1089_v33 = vpop.eup %1088  ;;  %v574_v32 = vld [vmem:[#allocation2 + $0x10] sm:$0xff] }
 0x21f   : > { %557 = vst.msk [vmem:[#allocation3 + $0x20] sm:$0xff] %vm335_vm1, %v548_v42  ;;  %v426_v35 = vmul.f32 %v1089_v33, %v394_v43  ;;  %v1091_v51 = vpop.eup %1090  ;;  %v398_v42 = vld [vmem:[#allocation3 + $0x30] sm:$0xff] }
 0x220   : > { %v604_v47 = vadd.f32 %v589_v46, %v572_v34  ;;  %v1093_v40 = vpop.eup %1092  ;;  %v429_v44 = vmul.f32 %v1091_v51, %v397_v60  ;;  %v573_v51 = vld [vmem:[#allocation2 + $0x8] sm:$0xff] }
 0x221   : > { %v425_v56 = vmul.f32 %v1093_v40, %v393_v41 }
 0x222   : > { %612 = vst.msk [vmem:[#allocation2] sm:$0xff] %vm335_vm1, %v604_v47 }
 0x223   : > { %v528_v36 = vpop.xlane.xlu1 %527 }
 0x224   : > { %v546_v49 = vadd.f32 %v528_v36, %v426_v35  ;;  %v577_v35 = vld [vmem:[#allocation2 + $0x28] sm:$0xff] }
 0x226   : > { %v584_v58 = vld [vmem:[#allocation3 + $0x20] sm:$0xff]  ;;  %555 = vst.msk [vmem:[#allocation3 + $0x10] sm:$0xff] %vm335_vm1, %v546_v49 }
 0x227   : > { %1094 = vlog2.f32 %v584_v58 }
 0x228   : > { %1096 = vpow2.f32 %v422_v54 }
 0x229   : > { %1098 = vpow2.f32 %v414_v57 }
 0x22b   : > { %v537_v52 = vpop.xlane.xlu1 %536 }
 0x22c   : > { %v549_v53 = vadd.f32 %v537_v52, %v429_v44  ;;  %v579_v44 = vld [vmem:[#allocation2 + $0x38] sm:$0xff] }
 0x22d   : > { %v1095_v61 = vpop.eup %1094  ;;  %v582_v0 = vld [vmem:[#allocation3 + $0x10] sm:$0xff]  ;;  %v525_v5 = vpop.xlane.xlu2 %524 }
 0x22e   : > { %v597_v63 = vmul.f32 0.6931472, %v1095_v61  ;;  %1100 = vlog2.f32 %v582_v0  ;;  %558 = vst.msk [vmem:[#allocation3 + $0x28] sm:$0xff] %vm335_vm1, %v549_v53  ;;  %v545_v3 = vadd.f32 %v525_v5, %v425_v56  ;;  %v1097_v50 = vpop.eup %1096  ;;  %v575_v61 = vld [vmem:[#allocation2 + $0x18] sm:$0xff] }
 0x22f   : > { %v1099_v28 = vpop.eup %1098  ;;  %v431_v26 = vmul.f32 %v1097_v50, %v399_v7  ;;  %1102 = vpow2.f32 %v420_v59 }
 0x230   : > { %v608_v8 = vadd.f32 %v597_v63, %v576_v55  ;;  %554 = vst.msk [vmem:[#allocation3 + $0x8] sm:$0xff] %vm335_vm1, %v545_v3  ;;  %v427_v39 = vmul.f32 %v1099_v28, %v395_v9  ;;  %v578_v3 = vld [vmem:[#allocation2 + $0x30] sm:$0xff] }
 0x232   : > { %616 = vst.msk [vmem:[#allocation2 + $0x20] sm:$0xff] %vm335_vm1, %v608_v8 }
 0x233   : > { %v543_v27 = vpop.xlane.xlu0 %542 }
 0x234   : > { %v1101_v29 = vpop.eup %1100  ;;  %v551_v30 = vadd.f32 %v543_v27, %v431_v26 }
 0x235   : > { %v593_v45 = vmul.f32 0.6931472, %v1101_v29  ;;  %v585_v48 = vld [vmem:[#allocation3 + $0x28] sm:$0xff]  ;;  %v531_v31 = vpop.xlane.xlu2 %530  ;;  %v1103_v37 = vpop.eup %1102 }
 0x236   : > { %1104 = vlog2.f32 %v585_v48  ;;  %560 = vst.msk [vmem:[#allocation3 + $0x38] sm:$0xff] %vm335_vm1, %v551_v30  ;;  %v547_v62 = vadd.f32 %v531_v31, %v427_v39  ;;  %v430_v33 = vmul.f32 %v1103_v37, %v398_v42 }
 0x237   : > { %v606_v4 = vadd.f32 %v593_v45, %v574_v32  ;;  %v581_v6 = vld [vmem:[#allocation3 + $0x8] sm:$0xff] }
 0x238   : > { %1106 = vlog2.f32 %v581_v6  ;;  %556 = vst.msk [vmem:[#allocation3 + $0x18] sm:$0xff] %vm335_vm1, %v547_v62 }
 0x239   : > { %614 = vst.msk [vmem:[#allocation2 + $0x10] sm:$0xff] %vm335_vm1, %v606_v4 }
 0x23c   : > { %v1105_v46 = vpop.eup %1104 }
 0x23d   : > { %v599_v34 = vmul.f32 0.6931472, %v1105_v46  ;;  %v587_v38 = vld [vmem:[#allocation3 + $0x38] sm:$0xff]  ;;  %v540_v43 = vpop.xlane.xlu2 %539 }
 0x23e   : > { %v1107_v47 = vpop.eup %1106  ;;  %1108 = vlog2.f32 %v587_v38  ;;  %v550_v36 = vadd.f32 %v540_v43, %v430_v33 }
 0x23f   : > { %v609_v49 = vadd.f32 %v599_v34, %v577_v35  ;;  %v591_v54 = vmul.f32 0.6931472, %v1107_v47  ;;  %v583_v58 = vld [vmem:[#allocation3 + $0x18] sm:$0xff] }
 0x240   : > { %1110 = vlog2.f32 %v583_v58  ;;  %559 = vst.msk [vmem:[#allocation3 + $0x30] sm:$0xff] %vm335_vm1, %v550_v36 }
 0x241   : > { %617 = vst.msk [vmem:[#allocation2 + $0x28] sm:$0xff] %vm335_vm1, %v609_v49  ;;  %v605_v57 = vadd.f32 %v591_v54, %v573_v51 }
 0x243   : > { %613 = vst.msk [vmem:[#allocation2 + $0x8] sm:$0xff] %vm335_vm1, %v605_v57 }
 0x244   : > { %v1109_v60 = vpop.eup %1108 }
 0x245   : > { %v603_v40 = vmul.f32 0.6931472, %v1109_v60 }
 0x246   : > { %v1111_v41 = vpop.eup %1110 }
 0x247   : > { %v611_v52 = vadd.f32 %v603_v40, %v579_v44  ;;  %v595_v53 = vmul.f32 0.6931472, %v1111_v41  ;;  %v586_v56 = vld [vmem:[#allocation3 + $0x30] sm:$0xff] }
 0x248   : > { %1112 = vlog2.f32 %v586_v56 }
 0x249   : > { %619 = vst.msk [vmem:[#allocation2 + $0x38] sm:$0xff] %vm335_vm1, %v611_v52  ;;  %v607_v0 = vadd.f32 %v595_v53, %v575_v61 }
 0x24b   : > { %615 = vst.msk [vmem:[#allocation2 + $0x18] sm:$0xff] %vm335_vm1, %v607_v0 }
 0x24e   : > { %v1113_v5 = vpop.eup %1112 }
 0x24f   : > { %v601_v63 = vmul.f32 0.6931472, %v1113_v5 }
 0x251   : > { %v610_v50 = vadd.f32 %v601_v63, %v578_v3 }
 0x253   : > { %618 = vst.msk [vmem:[#allocation2 + $0x30] sm:$0xff] %vm335_vm1, %v610_v50 }
 0x254 PF: > { %p942_p0 = scmp.ne.s32.totalorder %s1231_s15, 1 }
 0x256   : > { %623 = sbr.rel (%p942_p0) target bundleno = 914 (0x392), region = 48 }
 0x25b   : > { %v631_v55 = vld [vmem:[#allocation2 + $0x38] sm:$0xff]  ;;  %v629_v59 = vld [vmem:[#allocation2 + $0x28] sm:$0xff]  ;;  %v1252_v7 = vmov 0   ;;  %v630_v28 = vld [vmem:[#allocation2 + $0x30] sm:$0xff]  ;;  %vm722_vm2 = vcmask 523264  }
 0x25c   : > { %1115 = vset.pattern.permute.xlu1 %v1252_v7  ;;  %1114 = vset.pattern.permute.xlu0 %v1252_v7  ;;  %v627_v8 = vld [vmem:[#allocation2 + $0x18] sm:$0xff]  ;;  %v628_v9 = vld [vmem:[#allocation2 + $0x20] sm:$0xff]  ;;  %v626_v26 = vld [vmem:[#allocation2 + $0x10] sm:$0xff] }
 0x25d   : > { %669 = vperm.xlu0 %1114, %v631_v55   ;;  %659 = vperm.xlu1 %1115, %v629_v59   ;;  %v625_v27 = vld [vmem:[#allocation2 + $0x8] sm:$0xff]  ;;  %v624_v29 = vld [vmem:[#allocation2] sm:$0xff] }
 0x25e   : > { %1116 = vset.pattern.permute.xlu2 %v1252_v7  ;;  %v721_v7 = vld [vmem:[%s1678_s2 + $0x8] sm:$0x1] }
 0x25f   : > { %649 = vperm.xlu2 %1116, %v627_v8  }
 0x265   : > { %664 = vperm.xlu0 %1114, %v630_v28   ;;  %654 = vperm.xlu1 %1115, %v628_v9   ;;  %v720_v28 = vld [vmem:[%s1678_s2] sm:$0xff] }
 0x267   : > { %644 = vperm.xlu2 %1116, %v626_v26  }
 0x26d   : > { %639 = vperm.xlu0 %1114, %v625_v27   ;;  %634 = vperm.xlu1 %1115, %v624_v29  }
 0x2b9   : > { %v650_v30 = vpop.permute.xlu2 %649 }
 0x2ba   : > { %v678_v47 = vsub.f32 %v1424_v22, %v650_v30 }
 0x2c1   : > { %v645_v38 = vpop.permute.xlu2 %644 }
 0x2c2   : > { %v676_v54 = vsub.f32 %v1416_v18, %v645_v38 }
 0x2c4   : > { %v696_v58 = vmul.f32 1.442695, %v676_v54 }
 0x2cf   : > { %v670_v39 = vpop.permute.xlu0 %669  ;;  %v660_v45 = vpop.permute.xlu1 %659 }
 0x2d0   : > { %v686_v48 = vsub.f32 %v1428_v24, %v670_v39  ;;  %v687_v31 = vsub.f32 %v1430_v25, %v670_v39  ;;  %v682_v4 = vsub.f32 %v1412_v16, %v660_v45  ;;  %v683_v6 = vsub.f32 %v1414_v17, %v660_v45 }
 0x2d1   : > { %v679_v17 = vsub.f32 %v1426_v23, %v650_v30 }
 0x2d2   : > { %v716_v32 = vmul.f32 1.442695, %v686_v48  ;;  %v718_v62 = vmul.f32 1.442695, %v687_v31  ;;  %v708_v43 = vmul.f32 1.442695, %v682_v4 }
 0x2d3   : > { %v710_v49 = vmul.f32 1.442695, %v683_v6  ;;  %v702_v22 = vmul.f32 1.442695, %v679_v17 }
 0x2d4   : > { %1117 = vpow2.f32 %v716_v32 }
 0x2d5   : > { %1119 = vpow2.f32 %v718_v62 }
 0x2d7   : > { %v665_v37 = vpop.permute.xlu0 %664  ;;  %v655_v42 = vpop.permute.xlu1 %654 }
 0x2d8   : > { %v684_v46 = vsub.f32 %v1420_v20, %v665_v37  ;;  %v685_v33 = vsub.f32 %v1422_v21, %v665_v37  ;;  %v680_v34 = vsub.f32 %v1404_v12, %v655_v42  ;;  %v681_v24 = vsub.f32 %v1406_v13, %v655_v42 }
 0x2d9   : > { %v677_v13 = vsub.f32 %v1418_v19, %v645_v38  ;;  %v700_v21 = vmul.f32 1.442695, %v678_v47 }
 0x2da   : > { %v1118_v25 = vpop.eup %1117  ;;  %v712_v35 = vmul.f32 1.442695, %v684_v46  ;;  %v714_v36 = vmul.f32 1.442695, %v685_v33  ;;  %v704_v20 = vmul.f32 1.442695, %v680_v34 }
 0x2db   : > { %v1120_v16 = vpop.eup %1119  ;;  %737 = vmatpush.msra.mxu0 %v1118_v25  ;;  %956 = vmatpush.msra.mxu2 %v1118_v25  ;;  %v706_v12 = vmul.f32 1.442695, %v681_v24  ;;  %v698_v40 = vmul.f32 1.442695, %v677_v13 }
 0x2dc   : > { %1121 = vpow2.f32 %v712_v35  ;;  %760 = vmatpush.msra.mxu1 %v1120_v16  ;;  %964 = vmatpush.msra.mxu3 %v1120_v16 }
 0x2dd   : > { %1123 = vpow2.f32 %v714_v36 }
 0x2de   : > { %1125 = vpow2.f32 %v708_v43 }
 0x2df   : > { %1127 = vpow2.f32 %v710_v49  ;;  %v640_v51 = vpop.permute.xlu0 %639  ;;  %v635_v57 = vpop.permute.xlu1 %634 }
 0x2e0   : > { %1129 = vpow2.f32 %v704_v20  ;;  %v674_v18 = vsub.f32 %v1408_v14, %v640_v51  ;;  %v675_v23 = vsub.f32 %v1410_v15, %v640_v51  ;;  %v672_v60 = vsub.f32 %v1400_v10, %v635_v57 }
 0x2e1   : > { %1131 = vpow2.f32 %v706_v12  ;;  %v673_v41 = vsub.f32 %v1402_v11, %v635_v57 }
 0x2e2   : > { %v1122_v44 = vpop.eup %1121  ;;  %1133 = vpow2.f32 %v700_v21  ;;  %v692_v19 = vmul.f32 1.442695, %v674_v18  ;;  %v694_v53 = vmul.f32 1.442695, %v675_v23  ;;  %v688_v61 = vmul.f32 1.442695, %v672_v60 }
 0x2e3   : > { %v1124_v52 = vpop.eup %1123  ;;  %1135 = vpow2.f32 %v702_v22  ;;  %738 = vmatpush.msra.mxu0 %v1122_v44  ;;  %957 = vmatpush.msra.mxu2 %v1122_v44  ;;  %v690_v10 = vmul.f32 1.442695, %v673_v41 }
 0x2e4   : > { %v1126_v56 = vpop.eup %1125  ;;  %1137 = vpow2.f32 %v696_v58  ;;  %761 = vmatpush.msra.mxu1 %v1124_v52  ;;  %965 = vmatpush.msra.mxu3 %v1124_v52 }
 0x2e5   : > { %v1128_v14 = vpop.eup %1127  ;;  %1139 = vpow2.f32 %v698_v40  ;;  %739 = vmatpush.msra.mxu0 %v1126_v56  ;;  %958 = vmatpush.msra.mxu2 %v1126_v56 }
 0x2e6   : > { %v1130_v15 = vpop.eup %1129  ;;  %1141 = vpow2.f32 %v692_v19  ;;  %762 = vmatpush.msra.mxu1 %v1128_v14  ;;  %966 = vmatpush.msra.mxu3 %v1128_v14 }
 0x2e7   : > { %v1132_v11 = vpop.eup %1131  ;;  %1143 = vpow2.f32 %v694_v53  ;;  %740 = vmatpush.msra.mxu0 %v1130_v15  ;;  %959 = vmatpush.msra.mxu2 %v1130_v15 }
 0x2e8   : > { %v1134_v0 = vpop.eup %1133  ;;  %1145 = vpow2.f32 %v688_v61  ;;  %763 = vmatpush.msra.mxu1 %v1132_v11  ;;  %967 = vmatpush.msra.mxu3 %v1132_v11 }
 0x2e9   : > { %v1136_v5 = vpop.eup %1135  ;;  %1147 = vpow2.f32 %v690_v10  ;;  %741 = vmatpush.msra.mxu0 %v1134_v0  ;;  %960 = vmatpush.msra.mxu2 %v1134_v0 }
 0x2ea   : > { %v1138_v63 = vpop.eup %1137  ;;  %764 = vmatpush.msra.mxu1 %v1136_v5  ;;  %968 = vmatpush.msra.mxu3 %v1136_v5 }
 0x2eb   : > { %v1140_v3 = vpop.eup %1139  ;;  %742 = vmatpush.msra.mxu0 %v1138_v63  ;;  %961 = vmatpush.msra.mxu2 %v1138_v63 }
 0x2ec   : > { %v1142_v50 = vpop.eup %1141  ;;  %765 = vmatpush.msra.mxu1 %v1140_v3  ;;  %969 = vmatpush.msra.mxu3 %v1140_v3 }
 0x2ed   : > { %v1144_v55 = vpop.eup %1143  ;;  %743 = vmatpush.msra.mxu0 %v1142_v50  ;;  %962 = vmatpush.msra.mxu2 %v1142_v50 }
 0x2ee   : > { %v1146_v59 = vpop.eup %1145  ;;  %766 = vmatpush.msra.mxu1 %v1144_v55  ;;  %970 = vmatpush.msra.mxu3 %v1144_v55 }
 0x2ef   : > { %v1148_v8 = vpop.eup %1147  ;;  %744 = vmatpush.msra.mxu0 %v1146_v59  ;;  %963 = vmatpush.msra.mxu2 %v1146_v59 }
 0x2f0   : > { %767 = vmatpush.msra.mxu1 %v1148_v8  ;;  %971 = vmatpush.msra.mxu3 %v1148_v8 }
 0x2f1   : > { %944 = vmatmul.msk.f32.vlgmr.msra.gmra.mxu2 %vm722_vm2, %v721_v7  ;;  %946 = vmatmul.msk.f32.vlgmr.msra.gmra.mxu3 %vm722_vm2, %v721_v7 }
 0x2f2   : > { %943 = vmatmul.msk.f32.vlgmr.msra.gmra.mxu0 %vm722_vm2, %v720_v28  ;;  %945 = vmatmul.msk.f32.vlgmr.msra.gmra.mxu1 %vm722_vm2, %v720_v28 }
 0x36f   : > { %v746_v24 = vpop.f32.mrf.mxu0  ;;  %v769_v35 = vpop.f32.mrf.mxu1 }
 0x374   : > { %v749_v9 = vpop.f32.mrf.mxu2  ;;  %v772_v26 = vpop.f32.mrf.mxu3 }
 0x375   : > { %v775_v27 = vadd.f32 1e-09, %v749_v9  ;;  %v776_v29 = vadd.f32 1e-09, %v772_v26 }
 0x377   : > { %v777_v30 = vperm.slane %v775_v27, 0  ;;  %v778_v39 = vperm.slane %v776_v29, 0 }
 0x379   : > { %1149 = vrcp.f32 %v777_v30  ;;  %v790_v4 = vand.u32 2147483648, %v777_v30  ;;  %v788_v42 = vand.u32 2147483647, %v777_v30  ;;  %v805_v46 = vand.u32 2147483648, %v778_v39 }
 0x37a   : > { %1151 = vrcp.f32 %v778_v39  ;;  %v803_v34 = vand.u32 2147483647, %v778_v39  ;;  %vm784_vm5 = vweird.f32 %v777_v30  ;;  %vm799_vm7 = vweird.f32 %v778_v39 }
 0x37b   : > { %v791_v25 = vor.u32 1.1754944e-38, %v790_v4  ;;  %vm789_vm8 = vcmp.eq.f32.partialorder %v788_v42, 8.507059e+37  ;;  %v806_v36 = vor.u32 1.1754944e-38, %v805_v46 }
 0x37c   : > { %vm804_vm10 = vcmp.eq.f32.partialorder %v803_v34, 8.507059e+37 }
 0x37f   : > { %v1150_v45 = vpop.eup %1149 }
 0x380   : > { %v1152_v48 = vpop.eup %1151  ;;  %v780_v31 = vmul.f32 %v1150_v45, %v777_v30  ;;  %vm785_vm3 = vweird.f32 %v1150_v45 }
 0x381   : > { %v795_v32 = vmul.f32 %v1152_v48, %v778_v39  ;;  %vm800_vm4 = vweird.f32 %v1152_v48  ;;  %vm786_vm6 = vmor %vm784_vm5, %vm785_vm3 }
 0x382   : > { %v781_v62 = vsub.f32 1.0, %v780_v31  ;;  %vm801_vm9 = vmor %vm799_vm7, %vm800_vm4 }
 0x383   : > { %v796_v6 = vsub.f32 1.0, %v795_v32 }
 0x384   : > { %v782_v37 = vmul.f32 %v1150_v45, %v781_v62 }
 0x385   : > { %v797_v33 = vmul.f32 %v1152_v48, %v796_v6 }
 0x386   : > { %v783_v38 = vadd.f32 %v1150_v45, %v782_v37 }
 0x387   : > { %v798_v43 = vadd.f32 %v1152_v48, %v797_v33 }
 0x388   : > { %v787_v47 = vsel %vm786_vm6, %v1150_v45, %v783_v38 }
 0x389   : > { %v792_v16 = vsel %vm789_vm8, %v791_v25, %v787_v47  ;;  %v802_v49 = vsel %vm801_vm9, %v1152_v48, %v798_v43 }
 0x38a   : > { %v793_v17 = vmul.f32 %v792_v16, %v746_v24  ;;  %v807_v54 = vsel %vm804_vm10, %v806_v36, %v802_v49 }
 0x38b   : > { %v808_v20 = vmul.f32 %v807_v54, %v769_v35 }
 0x38c   : > { %v809_v12 = vadd.f32 %v793_v17, %v1355_v1 }
 0x38d   : > { %v810_v13 = vadd.f32 %v808_v20, %v1357_v2 }
 0x38e   : > { %v811_v21 = vmax.f32 %v809_v12, 0.0 }
 0x38f   : > { %v812_v22 = vmax.f32 %v810_v13, 0.0 }
 0x390   : > { %813 = vst [vmem:[%s1433_s21] sm:$0xff] %v811_v21 }
 0x391   : > { %814 = vst [vmem:[%s1433_s21 + $0x8] sm:$0xff] %v812_v22 }
 0x392 PF: > { %s953_s4 = sshll.u32 %s1235_s16, 4  ;;  %s832_s8 = sshll.u32 %s1433_s21, 4  ;;  %s833_s8 = int_to_ptr.vmem [resolvable:$true] %s832_s8 }
 0x393   : > { %s830_s7 = scalar_lea.hbm %s1679_s3, %s953_s4  ;;  %s816_s10 = scalar_lea.sflag [#allocation5], %s195_s29 }
 0x394   : > { %s834_s9 = sshll.u32 %s830_s7, 4  ;;  %s1173_s16 = scalar_lea.hbm %s1679_s3, 32  ;;  %s835_s9 = int_to_ptr.hbm [resolvable:$true] %s834_s9 }
 0x395   : > { %s1167_s11 = sshra.s32 %s835_s9, 4  ;;  %s1168_s11 = int_to_ptr.hbm [resolvable:$true] %s1167_s11 }
 0x396   : > { %s1169_s20 = scalar_lea.hbm %s1168_s11, 16  ;;  %p1174_p5 = scmp.lt.s32.totalorder %s1168_s11, %s1679_s3 }
 0x397   : > { %p1170_p1 = scmp.ne.s32.totalorder %s1168_s11, %s1169_s20  ;;  %p1175_p6 = scmp.lt.s32.totalorder %s1173_s16, %s1169_s20 }
 0x399   : > { %p1171_p2 = pnand %p1170_p1, %p1322_p3  ;;  %p1176_p7 = por %p1175_p6, %p1174_p5 }
 0x39b   : > { %p1172_p4 = pneg %p1171_p2 }
 0x39d   : > { %p1177_p8 = pnand %p1176_p7, %p1172_p4 }
 0x39f   : > { %1180 = shalt.err (!%p1177_p8)
}
 0x3a0   : > { %972 = dma.vmem_to_hbm [thread:$0]  (%p1322_p3), %s833_s8, 256, %s835_s9, %s816_s10  }
 0x3a1 PF: > { %p978_p10 = scmp.ge.s32.totalorder %s1247_s19, 2  ;;  %s846_s29 = sand.u32 1, %s1219_s12  }
 0x3a2   : > { %s847_s21 = scalar_lea.sflag [#allocation5], %s846_s29 }
 0x3a3   : > { %p975_p11 = pnand %p978_p10, %p1332_p9 }
 0x3a5   : > { %p976_p12 = pneg %p975_p11 }
 0x3a7   : > { %1214 = dma.done.wait (%p976_p12), %s847_s21, 256  }
 0x3a8   : > { %1216 = vsyncadd (%p976_p12), %s847_s21, 4294967040  ;;  %s16_s19 = sadd.s32 1, %s1247_s19   ;;  %s1682_s12 = smov %s1223_s13 }
 0x3a9   : > { %p13_p13 = scmp.ge.s32.totalorder %s16_s19, 6   ;;  %s1683_s13 = smov %s1227_s14 }
 0x3aa   : > { %s1684_s14 = smov %s1340_s28  ;;  %s1685_s15 = smov %s1239_s17 }
 0x3ab   : > { %s1686_s16 = smov %s1243_s18  ;;  %s1687_s17 = smov %s1690_s22 }
 0x3ac   : > { %s1688_s18 = smov %s1694_s23  ;;  %15 = sbr.rel (!%p13_p13) target bundleno = 5 (0x5), region = 83 }
 0x3b1   :  { %853 = vsyncpa [#allocation5], 1 }
 0x3b2   :  { %855 = vsyncpa [#allocation5 + $0x1], 1 }

</bundles_post_ra>
